<compile_context>
chip_gen: v7x
topology: tpu7x:2x2x1
jax: 0.10.0
libtpu: 0.0.40
codegen_flags: <defaults>
</compile_context>

<pallas_src>
import numpy as np
import jax
import jax.numpy as jnp
from jax.experimental import pallas as pl
from jax.experimental.pallas import tpu as pltpu
from scipy.optimize import linear_sum_assignment

ALPHA = 0.25   # focal alpha (fixed in the reference forward)
GAMMA = 2.0    # focal gamma (fixed in the reference forward)
# The wrapper lowers x**GAMMA as x*x; keep this honest.
assert GAMMA == 2.0, "update the focal cost if gamma ever changes"


def _round_up(x, m):
    return ((x + m - 1) // m) * m


def _largest_divisor_leq(n, cap):
    cap = max(1, min(n, cap))
    for t in range(cap, 0, -1):
        if n % t == 0:
            return t
    return 1


def _pick_query_tile(nq, max_tile):
    """Largest query tile <= max_tile that divides nq and is sublane-friendly."""
    if nq <= max_tile:
        return nq
    for t in range(max_tile, 7, -1):
        if nq % t == 0 and t % 8 == 0:
            return t
    return nq  # fall back: whole query dim per step


def _pick_row_budget(pd, vmem_budget=20 * 1024 * 1024):
    """Rows (BT*Q) per grid step sized so the in-kernel [rows, num_gt*D]
    intermediates plus the double-buffered lane-padded IO blocks stay well
    under the 32 MiB scoped-VMEM default (safe on v5e/v6e/v7x)."""
    pd_pad = _round_up(max(pd, 1), 128)
    # ~3 materialized [rows, pd_pad] f32 intermediates (tiled pose, abs-diff,
    # matmul lhs) + 2x-buffered cc/pose/out blocks, each lane-padded to 128.
    per_row = 4 * (3 * pd_pad + 2 * 3 * 128)
    rows = max(256, vmem_budget // per_row)
    return 1 << (int(rows).bit_length() - 1)


def _pick_tiles(bs, nq, pd):
    row_budget = _pick_row_budget(pd)
    q_tile = _pick_query_tile(nq, max_tile=min(row_budget, 1024))
    b_tile = _largest_divisor_leq(bs, max(1, row_budget // max(q_tile, 1)))
    # Keep >= 2 grid steps along a 'parallel' axis so both v7x TensorCores get
    # work (harmless on single-TC v5e/v6e).
    if (bs // b_tile) * (nq // q_tile) < 2:
        if b_tile > 1:
            b_tile = _largest_divisor_leq(bs, b_tile // 2)
        elif q_tile >= 16 and q_tile % 16 == 0:
            q_tile //= 2
    return b_tile, q_tile


def _cost_kernel(cc_ref, pose_ref, gt_ref, w_ref, cost_ref):
    """One grid step (whole batch sub-tile at once, no per-bb unroll):
         cc_ref:   [BT, Q, 1]      focal class cost (already * cost_class weight)
         pose_ref: [BT, Q, D]      predicted poses, D = num_joints*3
         gt_ref:   [BT, 1, P*D]    padded GT poses, people flattened along lanes
         w_ref:    [P*D, P_PAD]    constant block-diagonal reduction weights
         cost_ref: [BT, Q, P_PAD]  lane-dense cost tile (P padded to >=128 lanes)
    """
    bt, q, d = pose_ref.shape
    pd = gt_ref.shape[-1]
    num_gt = pd // d
    p_pad = cost_ref.shape[-1]

    pose = pose_ref[...].astype(jnp.float32)                 # [BT, Q, D]
    gt = gt_ref[...].astype(jnp.float32)                     # [BT, 1, P*D]

    # Lane-concatenated abs-diff: diff[b, q, p*D + d] = |pose[b,q,d] - gt[b,p,d]|.
    # Single ~lane-dense VPU pass over exactly the irreducible L1 element work;
    # no [Q, P, D] broadcast tensor and no per-GT accumulator rewrites.
    pose_t = jnp.concatenate([pose] * num_gt, axis=-1)        # [BT, Q, P*D]
    diff = jnp.abs(pose_t - gt)                               # [BT, Q, P*D]

    # Per-GT L1 reduction + output-column placement in ONE MXU matmul against a
    # constant block-diagonal weight matrix -> lane-dense [BT*Q, P_PAD] directly.
    x = diff.reshape(bt * q, pd)
    acc = jnp.dot(x, w_ref[...], preferred_element_type=jnp.float32,
                  precision=jax.lax.Precision.HIGHEST)        # [BT*Q, P_PAD]

    # Broadcast-add the (pre-scaled) focal class cost once, then a single
    # unmasked lane-dense store of the full tile.
    cc = cc_ref[...].reshape(bt * q, 1)                       # [BT*Q, 1]
    cost_ref[...] = (acc + cc).reshape(bt, q, p_pad).astype(cost_ref.dtype)


def compute_cost_matrix(pred_logits, pred_coords, joints_3d_norm, *,
                        cost_class=1.0, cost_pose=1.0, match_coord="norm",
                        grid_size=None, grid_center=None,
                        query_tile=None, batch_tile=None):
    """Returns the padded cost matrix of shape [bs, num_queries, P_PAD] (float32),
    where P_PAD = round_up(max_people, 128). Only the first max_people columns
    are meaningful; callers slice the valid columns."""
    bs, nq, _ = pred_logits.shape
    _, max_p, num_joints, cdim = joints_3d_norm.shape
    d = num_joints * cdim

    out_pose = pred_coords.reshape(bs, nq, num_joints, cdim)
    tgt_pose = joints_3d_norm
    w_pose = float(cost_pose)
    if match_coord == "abs":
        # norm2absolute is an elementwise affine transform (glue, not the hot path).
        out_pose = out_pose * grid_size + grid_center - grid_size / 2.0
        tgt_pose = tgt_pose * grid_size + grid_center - grid_size / 2.0
        w_pose = 0.01 * w_pose  # reference scales cost_pose by 0.01 in 'abs' mode

    out_pose = out_pose.reshape(bs, nq, d).astype(jnp.float32)
    gt_flat = tgt_pose.reshape(bs, 1, max_p * d).astype(jnp.float32)

    # Sigmoid focal class cost (GT class ids are all 1 in the reference forward),
    # computed lane-dense here in the wrapper (tiny fused elementwise op) so the
    # kernel never pushes 1-useful-lane transcendentals through the single EUP slot.
    z1 = pred_logits[..., 1].astype(jnp.float32)               # [bs, nq]
    prob = jax.nn.sigmoid(z1)
    neg = (1.0 - ALPHA) * (prob * prob) * (-jnp.log(1.0 - prob + 1e-8))
    pos = ALPHA * ((1.0 - prob) * (1.0 - prob)) * (-jnp.log(prob + 1e-8))
    cc = (float(cost_class) * (pos - neg))[..., None]           # [bs, nq, 1]

    p_pad = max(128, _round_up(max_p, 128))                     # lane-dense output width
    # Constant block-diagonal weights: W[p*D + j, p] = w_pose, else 0.  The MXU
    # matmul with W performs the per-GT L1 reduction AND scatters each result
    # into its output lane.
    w_np = np.zeros((max_p * d, p_pad), np.float32)
    for p in range(max_p):
        w_np[p * d:(p + 1) * d, p] = w_pose
    w = jnp.asarray(w_np)

    b_tile, q_tile = _pick_tiles(bs, nq, max_p * d)
    if query_tile is not None:
        q_tile = query_tile
    if batch_tile is not None:
        b_tile = batch_tile

    grid = (bs // b_tile, nq // q_tile)
    return pl.pallas_call(
        _cost_kernel,
        out_shape=jax.ShapeDtypeStruct((bs, nq, p_pad), jnp.float32),
        grid_spec=pltpu.PrefetchScalarGridSpec(
            num_scalar_prefetch=0,
            grid=grid,
            in_specs=[
                pl.BlockSpec((b_tile, q_tile, 1), lambda bi, qi: (bi, qi, 0)),
                pl.BlockSpec((b_tile, q_tile, d), lambda bi, qi: (bi, qi, 0)),
                pl.BlockSpec((b_tile, 1, max_p * d), lambda bi, qi: (bi, 0, 0)),
                pl.BlockSpec((max_p * d, p_pad), lambda bi, qi: (0, 0)),
            ],
            out_specs=pl.BlockSpec((b_tile, q_tile, p_pad),
                                   lambda bi, qi: (bi, qi, 0)),
        ),
        compiler_params=pltpu.CompilerParams(
            dimension_semantics=("parallel", "parallel"),
            vmem_limit_bytes=32 * 1024 * 1024,
        ),
    )(cc, out_pose, gt_flat, w)


def hungarian_match(outputs, meta, *, cost_class=1.0, cost_pose=1.0, match_coord="norm",
                    grid_size=None, grid_center=None):
    """Mirrors HungarianMatcher.forward. Returns (list of (pred_idx, tgt_idx) int64
    arrays, valid cost matrix [bs, nq, max_people])."""
    pred_logits = outputs["pred_logits"]
    pred_coords = outputs["pred_poses"]["outputs_coord"]
    gt_3d = meta[0]["joints_3d_norm"]
    num_person = np.asarray(meta[0]["num_person"])
    max_p = gt_3d.shape[1]

    c_pad = compute_cost_matrix(pred_logits, pred_coords, gt_3d,
                                cost_class=cost_class, cost_pose=cost_pose,
                                match_coord=match_coord,
                                grid_size=grid_size, grid_center=grid_center)

    # Slice away the lane padding ON DEVICE so the D2H copy only moves the
    # meaningful [bs, nq, max_p] columns (P_PAD=128 would be up to ~32x more bytes).
    c_valid = c_pad[:, :, :max_p]

    # TODO(synk): overlap per-batch async D2H copies with the scipy solves
    # (thread pool) to hide the transfer behind the host Hungarian solver.
    c_host = np.asarray(jax.device_get(c_valid))

    # TODO(synk): linear_sum_assignment (Hungarian algorithm) is a sequential
    # combinatorial solver with no clean Pallas equivalent; executed on host,
    # matching the reference (which runs it on the .cpu() cost matrix).
    indices = []
    for b in range(c_host.shape[0]):
        n = int(num_person[b])
        i, j = linear_sum_assignment(c_host[b, :, :n])
        indices.append((np.asarray(i, dtype=np.int64), np.asarray(j, dtype=np.int64)))
    return indices, c_valid


def _reference_cost_numpy(pred_logits, pred_coords, joints_3d_norm,
                          cost_class=1.0, cost_pose=1.0):
    """Pure-numpy replica of the PyTorch cost computation (norm mode), for validation."""
    logits = np.asarray(pred_logits, np.float64)
    bs, nq, _ = logits.shape
    prob = 1.0 / (1.0 + np.exp(-logits))
    p1 = prob[..., 1:2]                                      # tgt class id is 1
    neg = (1 - ALPHA) * p1 ** GAMMA * -np.log(1 - p1 + 1e-8)
    pos = ALPHA * (1 - p1) ** GAMMA * -np.log(p1 + 1e-8)
    cclass = pos - neg                                       # [bs, nq, 1]

    gt = np.asarray(joints_3d_norm, np.float64)
    _, max_p, J, cd = gt.shape
    pose = np.asarray(pred_coords, np.float64).reshape(bs, nq, J * cd)
    gt = gt.reshape(bs, max_p, J * cd)
    cpose = np.abs(pose[:, :, None, :] - gt[:, None, :, :]).sum(-1)   # [bs, nq, max_p]
    return cost_pose * cpose + cost_class * cclass


if __name__ == "__main__":
    # Small deterministic example consistent with the module's forward.
    bs, num_queries, num_classes = 2, 16, 2
    num_joints, cdim, max_people = 15, 3, 4
    num_person = np.array([3, 2], dtype=np.int32)

    key = jax.random.PRNGKey(0)
    k1, k2, k3 = jax.random.split(key, 3)
    pred_logits = jax.random.normal(k1, (bs, num_queries, num_classes), jnp.float32)
    pred_coords = jax.random.uniform(k2, (bs, num_queries, num_joints * cdim), jnp.float32)
    joints_3d_norm = jax.random.uniform(k3, (bs, max_people, num_joints, cdim), jnp.float32)

    outputs = {
        "pred_logits": pred_logits,
        "pred_poses": {"outputs_coord": pred_coords},
    }
    meta = [{"joints_3d_norm": joints_3d_norm, "num_person": num_person}]

    indices, C = hungarian_match(outputs, meta, cost_class=1.0, cost_pose=1.0,
                                 match_coord="norm")

    # Validate the Pallas cost matrix against a pure-numpy reference.
    C_ref = _reference_cost_numpy(pred_logits, pred_coords, joints_3d_norm)
    np.testing.assert_allclose(np.asarray(C), C_ref, rtol=1e-4, atol=1e-4)

    # Sanity: per-batch match size == min(num_queries, num_person[b]).
    for b, (i, j) in enumerate(indices):
        assert len(i) == len(j) == min(num_queries, int(num_person[b]))

    jax.block_until_ready(C)
    print("KERNEL_OK")
</pallas_src>

<mosaic_0001>
module attributes {stable_mosaic.version = 11 : i64} {
  func.func @_cost_kernel(%arg0: i32, %arg1: i32, %arg2: memref<1x16x1xf32, #tpu.memory_space<vmem>>, %arg3: memref<1x16x45xf32, #tpu.memory_space<vmem>>, %arg4: memref<1x1x180xf32, #tpu.memory_space<vmem>>, %arg5: memref<180x128xf32, #tpu.memory_space<vmem>>, %arg6: memref<1x16x128xf32, #tpu.memory_space<vmem>>) attributes {dimension_semantics = [#tpu.dimension_semantics<parallel>, #tpu.dimension_semantics<parallel>], iteration_bounds = array<i64: 2, 1>, scalar_prefetch = 0 : i64, scratch_operands = 0 : i64, tpu.core_type = #tpu.core_type<tc>, window_params = [{transform_indices = @transform_0, window_bounds = array<i64: 1, 16, 1>}, {transform_indices = @transform_1, window_bounds = array<i64: 1, 16, 45>}, {transform_indices = @transform_2, window_bounds = array<i64: 1, 1, 180>}, {pipeline_mode = #tpu.pipeline_mode<synchronous>, transform_indices = @transform_3, window_bounds = array<i64: 180, 128>}, {transform_indices = @transform_4, window_bounds = array<i64: 1, 16, 128>}]} {
    %c0 = arith.constant 0 : index
    %c0_0 = arith.constant 0 : index
    %c0_1 = arith.constant 0 : index
    %0 = vector.load %arg3[%c0, %c0_0, %c0_1] : memref<1x16x45xf32, #tpu.memory_space<vmem>>, vector<1x16x45xf32>
    %c0_2 = arith.constant 0 : index
    %c0_3 = arith.constant 0 : index
    %c0_4 = arith.constant 0 : index
    %1 = vector.load %arg4[%c0_2, %c0_3, %c0_4] : memref<1x1x180xf32, #tpu.memory_space<vmem>>, vector<1x1x180xf32>
    %2 = tpu.concatenate %0, %0, %0, %0 in 2 : vector<1x16x45xf32>, vector<1x16x45xf32>, vector<1x16x45xf32>, vector<1x16x45xf32> -> vector<1x16x180xf32>
    %3 = vector.broadcast %1 : vector<1x1x180xf32> to vector<1x16x180xf32>
    %4 = arith.subf %2, %3 : vector<1x16x180xf32>
    %5 = math.absf %4 : vector<1x16x180xf32>
    %6 = vector.shape_cast %5 : vector<1x16x180xf32> to vector<16x180xf32>
    %c0_5 = arith.constant 0 : index
    %c0_6 = arith.constant 0 : index
    %7 = vector.load %arg5[%c0_5, %c0_6] : memref<180x128xf32, #tpu.memory_space<vmem>>, vector<180x128xf32>
    %cst = arith.constant dense<0.000000e+00> : vector<16x128xf32>
    %8 = tpu.matmul %6, %7, %cst {dimension_numbers = #tpu.dot_dimension_numbers<[1], [0], [0], [1], [0, 0, 1, 1], [], []>, precision = #tpu.contract_precision<fp32>} : vector<16x180xf32>, vector<180x128xf32>, vector<16x128xf32> -> vector<16x128xf32>
    %c0_7 = arith.constant 0 : index
    %c0_8 = arith.constant 0 : index
    %c0_9 = arith.constant 0 : index
    %9 = vector.load %arg2[%c0_7, %c0_8, %c0_9] : memref<1x16x1xf32, #tpu.memory_space<vmem>>, vector<1x16x1xf32>
    %10 = vector.shape_cast %9 : vector<1x16x1xf32> to vector<16x1xf32>
    %11 = vector.broadcast %10 : vector<16x1xf32> to vector<16x128xf32>
    %12 = arith.addf %8, %11 : vector<16x128xf32>
    %13 = vector.shape_cast %12 : vector<16x128xf32> to vector<1x16x128xf32>
    %c0_10 = arith.constant 0 : index
    %c0_11 = arith.constant 0 : index
    %c0_12 = arith.constant 0 : index
    %14 = vector.load %arg6[%c0_10, %c0_11, %c0_12] : memref<1x16x128xf32, #tpu.memory_space<vmem>>, vector<1x16x128xf32>
    tpu.vector_store %arg6[%c0_10, %c0_11, %c0_12], %13 {strides = array<i32>} : memref<1x16x128xf32, #tpu.memory_space<vmem>>, vector<1x16x128xf32>,
    return
  }
  func.func @transform_0(%arg0: i32, %arg1: i32) -> (i32, i32, i32) {
    %c0_i32 = arith.constant 0 : i32
    %c0_i32_0 = arith.constant 0 : i32
    return %arg0, %arg1, %c0_i32 : i32, i32, i32
  }
  func.func @transform_1(%arg0: i32, %arg1: i32) -> (i32, i32, i32) {
    %c0_i32 = arith.constant 0 : i32
    %c0_i32_0 = arith.constant 0 : i32
    return %arg0, %arg1, %c0_i32 : i32, i32, i32
  }
  func.func @transform_2(%arg0: i32, %arg1: i32) -> (i32, i32, i32) {
    %c0_i32 = arith.constant 0 : i32
    %c0_i32_0 = arith.constant 0 : i32
    %c0_i32_1 = arith.constant 0 : i32
    return %arg0, %c0_i32, %c0_i32_0 : i32, i32, i32
  }
  func.func @transform_3(%arg0: i32, %arg1: i32) -> (i32, i32) {
    %c0_i32 = arith.constant 0 : i32
    %c0_i32_0 = arith.constant 0 : i32
    %c0_i32_1 = arith.constant 0 : i32
    return %c0_i32, %c0_i32_0 : i32, i32
  }
  func.func @transform_4(%arg0: i32, %arg1: i32) -> (i32, i32, i32) {
    %c0_i32 = arith.constant 0 : i32
    %c0_i32_0 = arith.constant 0 : i32
    return %arg0, %arg1, %c0_i32 : i32, i32, i32
  }
}

</mosaic_0001>

<bundles_post_ra>
// kernel: tpu_custom_call.1
= control target key start
LH: loop header
LB: loop body
LE: loop exit
PB: predicated region body
PF: predicated region fallthrough
CT: control target
= control target key end

     0   :  { %9 = vsyncpa [#allocation3], 0  ;;  %s2468_s0 = inlined_call_operand.vmem [shape: f32[2,16,1], index: 0, kind: input, shape index: {}]   ;;  %s2469_s1 = inlined_call_operand.vmem [shape: f32[2,16,45], index: 1, kind: input, shape index: {}]   ;;  %s2470_s2 = inlined_call_operand.vmem [shape: f32[2,1,180], index: 2, kind: input, shape index: {}]   ;;  %s2471_s3 = inlined_call_operand.hbm [shape: f32[180,128], index: 3, kind: input, shape index: {}]   ;;  %s2472_s4 = inlined_call_operand.hbm [shape: f32[2,16,128], index: 4, kind: output, shape index: {}]  }
   0x1   :  { %10 = vsyncpa [#allocation4], 0 }
   0x2   :  { %12 = vsyncpa [#allocation4 + $0x1], 0  ;;  %s1798_s15 = smov 0   ;;  %s1800_s16 = smov 0  }
   0x3   :  { %s1802_s17 = smov 0   ;;  %s1804_s18 = smov 0  }
   0x4   :  { %s1806_s19 = smov 0   ;;  %s1808_s20 = smov 0  }
   0x5 LB: > { %s1332_s21 = sadd.s32 4294967295, %s1759_s20   ;;  %s1333_s22 = sadd.s32 4294967294, %s1759_s20   ;;  %s1759_s20 = sphi %s1808_s20, %s18_s20   ;;  %s1755_s19 = sphi %s1806_s19, %s2568_s19   ;;  %s1751_s18 = sphi %s1804_s18, %s2567_s18   ;;  %s1747_s17 = sphi %s1802_s17, %s2566_s17   ;;  %s1743_s16 = sphi %s1800_s16, %s2565_s16   ;;  %s1739_s15 = sphi %s1798_s15, %s2564_s15  }
   0x6   : > { %s30_s23 = sadd.s32 1, %s1755_s19  ;;  %s142_s24 = sadd.s32 1, %s1747_s17 }
   0x7   : > { %p32_p0 = scmp.ge.s32.totalorder %s30_s23, 2  ;;  %p152_p1 = scmp.ne.s32.totalorder %s1747_s17, %s1743_s16 }
   0x8   : > { %p153_p2 = scmp.eq.s32.totalorder %s1332_s21, 1  ;;  %p158_p3 = scmp.ne.s32.totalorder %s1743_s16, %s1739_s15 }
   0x9   : > { %s2570_s23 = smov (%p32_p0, %s30_s23), 0  ;;  %p159_p5 = scmp.eq.s32.totalorder %s1333_s22, 1 }
   0xa   : > { %p1838_p4 = por %p153_p2, %p152_p1  ;;  %s137_s26 = ssub.s32 %s1755_s19, %s2570_s23 }
   0xb   : > { %p1334_p6 = scmp.ge.s32.totalorder %s1759_s20, 1  ;;  %p140_p7 = scmp.eq.s32.totalorder %s137_s26, 0 }
   0xc   : > { %s2504_s25 = scalar_select %p1838_p4, 1, 0 }
   0xd   : > { %p1845_p8 = por %p159_p5, %p158_p3  ;;  %p166_p9 = scmp.lt.s32.totalorder %s1759_s20, 3 }
   0xe   : > { %s1851_s28 = scalar_select %p140_p7, %s1747_s17, %s142_s24  }
   0xf   : > { %s2505_s27 = scalar_select %p1845_p8, 1, 0 }
  0x10   : > { %p1853_p10 = pnand %p1334_p6, %p166_p9  ;;  %p1857_p11 = scmp.eq.s32.totalorder %s1332_s21, 0 }
  0x11   : > { %s1761_s5 = smov [#allocation2]   ;;  %s1649_s10 = scalar_lea.hbm %s2471_s3, 2944 }
  0x12   : > { %s2506_s29 = scalar_select %p1853_p10, 1, 0 }
  0x13   : > { %s2507_s30 = scalar_select %p1857_p11, 1, 0 }
  0x14   : > { %p1577_p12 = pneg %p1853_p10  ;;  %s178_s6 = sshll.u32 %s1761_s5, 4  ;;  %s179_s6 = int_to_ptr.vmem [resolvable:$true] %s178_s6 }
  0x15   : > { %p1650_p0 = scmp.ne.s32.totalorder %s2471_s3, %s1649_s10  ;;  %p1656_p5 = scmp.lt.u32.totalorder %s1649_s10, %s2471_s3 }
  0x16   : > { %p1865_p13 = pnand %p1857_p11, %p1577_p12 }
  0x18   : > { %p1651_p1 = pneg %p1865_p13 }
  0x1a   : > { %p1652_p2 = pnand %p1651_p1, %p1650_p0 }
  0x1c   : > { %p1653_p3 = pneg %p1652_p2 }
  0x1e   : > { %p1658_p6 = pnand %p1656_p5, %p1653_p3 }
  0x20   : > { %1661 = shalt.err (!%p1658_p6)
}
  0x21   : > { %s1662_s21 = scalar_lea.vmem %s179_s6, 2944  ;;  %p1670_p8 = scmp.lt.s32.totalorder %s179_s6, %s179_s6 }
  0x22   : > { %p1663_p7 = scmp.ne.s32.totalorder %s179_s6, %s1662_s21  ;;  %p1671_p4 = scmp.lt.s32.totalorder %s1662_s21, %s1662_s21 }
  0x24   : > { %p1665_p9 = pnand %p1663_p7, %p1651_p1  ;;  %p1672_p11 = por %p1671_p4, %p1670_p8 }
  0x26   : > { %p1666_p12 = pneg %p1665_p9 }
  0x28   : > { %p1673_p10 = pnand %p1672_p11, %p1666_p12 }
  0x2a   : > { %1676 = shalt.err (!%p1673_p10)
}
  0x2b   : > { %s1762_s22 = smov 128   ;;  %s1763_s24 = smov 8  }
  0x2c   : > { %1580 = dma.hbm_to_vmem [thread:$0]  (!%p1865_p13), %s2471_s3, 2944, %s179_s6, [#allocation3], %s1762_s22, %s1762_s22, %s1763_s24  }
  0x2d   : > { %p2509_p0 = scmp.ne.s32.totalorder %s2506_s29, 0 }
  0x2f   : > { %227 = sbr.rel (%p2509_p0) target bundleno = 528 (0x210), region = 36 }
  0x36   : > { %p2510_p2 = scmp.ne.s32.totalorder %s2507_s30, 0 }
  0x38   : > { %1730 = dma.done.wait (%p2510_p2), [#allocation3], 2944  }
  0x39   : > { %1732 = vsyncadd (%p2510_p2), [#allocation3], 4294964352  ;;  %p271_p4 = scmp.lt.s32.totalorder %s1751_s18, 1  ;;  %v2488_v0 = vmov 0.0|0.0   ;;  %v346_v3 = vld [vmem:[#allocation2] sm:$0xff]  ;;  %s1765_s30 = smov 45  }
  0x3a   : > { %1452 = vmatprep.subr.bf16.mxu0 %v2488_v0  ;;  %1353 = vmatprep.subr.bf16.mxu1 %v2488_v0  ;;  %s1766_s10 = smov 90   ;;  %v347_v4 = vld [vmem:[#allocation2 + $0x8] sm:$0xff]  ;;  %v393_v5 = vand.u32 4294901760, %v346_v3  ;;  %v348_v6 = vld [vmem:[#allocation2 + $0x10] sm:$0xff]  ;;  %v349_v7 = vld [vmem:[#allocation2 + $0x18] sm:$0xff]  ;;  %s1767_s11 = smov 7  }
  0x3b   : > { %s1895_s7 = scalar_select %p271_p4, %s1751_s18, 1  ;;  %v396_v8 = vand.u32 4294901760, %v347_v4  ;;  %v399_v9 = vand.u32 4294901760, %v348_v6  ;;  %v402_v10 = vand.u32 4294901760, %v349_v7  ;;  %v350_v11 = vld [vmem:[#allocation2 + $0x20] sm:$0xff]  ;;  %v351_v12 = vld [vmem:[#allocation2 + $0x28] sm:$0xff] }
  0x3c   : > { %v1910_v13 = vld [vmem:[#allocation2 + $0x30] sm:$0xff]  ;;  %v1912_v14 = vsub.f32 %v346_v3, %v393_v5  ;;  %v405_v15 = vand.u32 4294901760, %v350_v11  ;;  %v408_v16 = vand.u32 4294901760, %v351_v12  ;;  %v1914_v17 = vld [vmem:[#allocation2 + $0x38] sm:$0xff]  ;;  %v1916_v18 = vld [vmem:[#allocation2 + $0x40] sm:$0xff]  ;;  %vm388_vm0 = vcmask 1043456  }
  0x3d   : > { %s1350_s29 = sshll.u32 %s1895_s7, 4  ;;  %v1918_v19 = vld [vmem:[#allocation2 + $0x48] sm:$0xff]  ;;  %v1920_v20 = vpack.c.bf16 %v396_v8, %v393_v5  ;;  %v1922_v21 = vsub.f32 %v347_v4, %v396_v8  ;;  %v1924_v22 = vsub.f32 %v348_v6, %v399_v9  ;;  %v411_v23 = vand.u32 4294901760, %v1910_v13  ;;  %v1927_v24 = vld [vmem:[#allocation2 + $0x50] sm:$0xff]  ;;  %v1929_v25 = vld [vmem:[#allocation2 + $0x58] sm:$0xff]  ;;  %s1344_s12 = sshll.u32 %s1895_s7, 1 }
  0x3e   : > { %s288_s9 = scalar_lea.vmem %s2469_s1, %s1350_s29  ;;  %v1933_v26 = vpack.c.bf16 %v402_v10, %v399_v9  ;;  %v1935_v27 = vsub.f32 %v349_v7, %v402_v10  ;;  %v1937_v28 = vsub.f32 %v350_v11, %v405_v15  ;;  %v414_v29 = vand.u32 4294901760, %v1914_v17  ;;  %v358_v30 = vld [vmem:[#allocation2 + $0x60] sm:$0xff]  ;;  %v359_v35 = vld [vmem:[#allocation2 + $0x68] sm:$0xff]  ;;  %v1956_v39 = vld [vmem:[#allocation2 + $0x70] sm:$0xff]  ;;  %s278_s21 = scalar_lea.vmem %s2468_s0, %s1350_s29 }
  0x3f   : > { %v1903_v1 = vld [vmem:[%s288_s9] sm:$0xff]  ;;  %v1905_v2 = vld [vmem:[%s288_s9 + $0x8] sm:$0xff]  ;;  %1454 = vmatpush1.bf16.msra.mxu0 %v1920_v20  ;;  %1355 = vmatpush1.bf16.msra.mxu1 %v1920_v20  ;;  %v1942_v31 = vsub.f32 %v351_v12, %v408_v16  ;;  %v1945_v32 = vsub.f32 %v1910_v13, %v411_v23  ;;  %v417_v33 = vand.u32 4294901760, %v1916_v18  ;;  %v420_v34 = vand.u32 4294901760, %v1918_v19  ;;  %v1968_v45 = vld [vmem:[#allocation2 + $0x88] sm:$0xff]  ;;  %s293_s26 = scalar_lea.vmem %s2470_s2, %s1344_s12  ;;  %s267_s5 = sand.u32 1, %s1743_s16  }
  0x40   : > { %300 = vrot.lane.b32.xlu1 %v1903_v1, %s1765_s30  ;;  %306 = vrot.lane.b32.xlu0 %v1903_v1, %s1766_s10  ;;  %v1952_v36 = vsub.f32 %v1914_v17, %v414_v29  ;;  %v423_v37 = vand.u32 4294901760, %v1927_v24  ;;  %v426_v38 = vand.u32 4294901760, %v1929_v25  ;;  %v1958_v40 = vld [vmem:[#allocation2 + $0x78] sm:$0xff]  ;;  %v429_v43 = vand.u32 4294901760, %v358_v30  ;;  %v1966_v44 = vld [vmem:[#allocation2 + $0x80] sm:$0xff]  ;;  %v1987_v53 = vld [vmem:[#allocation2 + $0x90] sm:$0xff] }
  0x41   : > { %1455 = vmatprep.subr.bf16.mxu0 %v2488_v0  ;;  %1356 = vmatprep.subr.bf16.mxu1 %v2488_v0  ;;  %v1961_v41 = vsub.f32 %v1916_v18, %v417_v33  ;;  %v1964_v42 = vsub.f32 %v1918_v19, %v420_v34  ;;  %v432_v48 = vand.u32 4294901760, %v359_v35  ;;  %v1981_v49 = vpack.c.bf16 %v408_v16, %v405_v15  ;;  %v1995_v57 = vld [vmem:[#allocation2 + $0x98] sm:$0xff]  ;;  %v1997_v58 = vld [vmem:[#allocation2 + $0xa0] sm:$0xff]  ;;  %v2009_v61 = vld [vmem:[#allocation2 + $0xa8] sm:$0xff]  ;;  %s1339_s7 = sshll.u32 %s267_s5, 4  ;;  %s1352_s8 = sshll.u32 %s1751_s18, 8 }
  0x42   : > { %v1974_v46 = vsub.f32 %v1927_v24, %v423_v37  ;;  %v1977_v47 = vsub.f32 %v1929_v25, %v426_v38  ;;  %v1983_v50 = vsub.f32 %v358_v30, %v429_v43  ;;  %v2484_v51 = vand.u32 4294901760, %v1956_v39  ;;  %s269_s29 = scalar_lea.vmem [#allocation5], %s1339_s7  ;;  %p2562_p10 = scmp.ne.s32.totalorder %s2504_s25, 0 }
  0x43   : > { %1457 = vmatpush1.bf16.msra.mxu0 %v1933_v26  ;;  %1358 = vmatpush1.bf16.msra.mxu1 %v1933_v26  ;;  %v2483_v52 = vand.u32 4294901760, %v1958_v40  ;;  %v1991_v54 = vsub.f32 %v359_v35, %v432_v48  ;;  %v2482_v55 = vand.u32 4294901760, %v1966_v44  ;;  %v2481_v56 = vand.u32 4294901760, %v1968_v45  ;;  %s1211_s6 = sshll.u32 %s269_s29, 4  ;;  %s1770_s18 = smov [#allocation5]   ;;  %s2415_s6 = int_to_ptr.vmem [resolvable:$true] %s1211_s6 }
  0x44   : > { %312 = vrot.lane.b32.xlu0 %v1903_v1, %s1767_s11  ;;  %308 = vrot.lane.b32.xlu1 %v1905_v2, %s1766_s10  ;;  %v2002_v59 = vsub.f32 %v1956_v39, %v2484_v51  ;;  %v2480_v3 = vand.u32 4294901760, %v1987_v53  ;;  %v2024_v4 = vpack.c.bf16 %v414_v29, %v411_v23  ;;  %v2479_v5 = vand.u32 4294901760, %v1995_v57  ;;  %s2420_s10 = scalar_lea.hbm %s2472_s4, %s1352_s8  ;;  %s1677_s12 = scalar_lea.vmem %s2415_s6, 256 }
  0x45   : > { %1458 = vmatprep.subr.bf16.mxu0 %v2488_v0  ;;  %1359 = vmatprep.subr.bf16.mxu1 %v2488_v0  ;;  %v2007_v60 = vsub.f32 %v1958_v40, %v2483_v52  ;;  %v2014_v62 = vsub.f32 %v1966_v44, %v2482_v55  ;;  %v2019_v63 = vsub.f32 %v1968_v45, %v2481_v56  ;;  %v2478_v6 = vand.u32 4294901760, %v1997_v58  ;;  %p1678_p8 = scmp.ne.s32.totalorder %s2415_s6, %s1677_s12  ;;  %s1681_s13 = sshll.u32 %s1770_s18, 4  ;;  %s1682_s13 = int_to_ptr.vmem [resolvable:$false] %s1681_s13 }
  0x46   : > { %2511 = vst [vmem:[#allocation8_spill] sm:$0xff] %v2002_v59  ;;  %2515 = vst [vmem:[#allocation12_spill] sm:$0xff] %v2024_v4  ;;  %v2033_v7 = vsub.f32 %v1987_v53, %v2480_v3  ;;  %v2477_v8 = vand.u32 4294901760, %v2009_v61  ;;  %v513_v9 = vand.u32 4294901760, %v1912_v14  ;;  %v520_v10 = vand.u32 4294901760, %v1922_v21  ;;  %s1683_s14 = scalar_lea.vmem %s1682_s13, 512  ;;  %p1684_p1 = scmp.lt.s32.totalorder %s2415_s6, %s1682_s13 }
  0x47   : > { %2512 = vst [vmem:[#allocation9_spill] sm:$0xff] %v2007_v60  ;;  %2513 = vst [vmem:[#allocation10_spill] sm:$0xff] %v2014_v62  ;;  %1460 = vmatpush1.bf16.msra.mxu0 %v1981_v49  ;;  %1361 = vmatpush1.bf16.msra.mxu1 %v1981_v49  ;;  %v2038_v11 = vpack.c.bf16 %v420_v34, %v417_v33  ;;  %v2040_v12 = vpack.c.bf16 %v426_v38, %v423_v37  ;;  %v527_v24 = vand.u32 4294901760, %v1924_v22  ;;  %vm318_vm1 = vcmask 367616   ;;  %p1679_p11 = pnand %p1678_p8, %p2562_p10  ;;  %p1685_p3 = scmp.lt.s32.totalorder %s1683_s14, %s1677_s12 }
  0x48   : > { %314 = vrot.lane.b32.xlu0 %v1905_v2, %s1767_s11  ;;  %302 = vrot.lane.b32.xlu1 %v1905_v2, %s1765_s30  ;;  %2514 = vst [vmem:[#allocation11_spill] sm:$0xff] %v2019_v63  ;;  %2516 = vst [vmem:[#allocation13_spill] sm:$0xff] %v2033_v7  ;;  %v2045_v13 = vsub.f32 %v1995_v57, %v2479_v5  ;;  %v2050_v15 = vsub.f32 %v1997_v58, %v2478_v6  ;;  %v534_v25 = vand.u32 4294901760, %v1935_v27  ;;  %vm321_vm2 = vcmask 736256   ;;  %s2422_s11 = scalar_lea.sflag [#allocation4], %s267_s5 }
  0x49   : > { %1461 = vmatprep.subr.bf16.mxu0 %v2488_v0  ;;  %1362 = vmatprep.subr.bf16.mxu1 %v2488_v0  ;;  %2517 = vst [vmem:[#allocation14_spill] sm:$0xff] %v2038_v11  ;;  %2518 = vst [vmem:[#allocation15_spill] sm:$0xff] %v2040_v12  ;;  %v2052_v16 = vpack.c.bf16 %v432_v48, %v429_v43  ;;  %v2057_v17 = vsub.f32 %v2009_v61, %v2477_v8  ;;  %v541_v29 = vand.u32 4294901760, %v1937_v28  ;;  %vm324_vm3 = vcmask 56320   ;;  %p1680_p13 = pneg %p1679_p11  ;;  %p1686_p5 = por %p1685_p3, %p1684_p1 }
  0x4a   : > { %2519 = vst [vmem:[#allocation16_spill] sm:$0xff] %v2045_v13  ;;  %2520 = vst [vmem:[#allocation17_spill] sm:$0xff] %v2050_v15  ;;  %v2059_v18 = vpack.c.bf16 %v520_v10, %v513_v9  ;;  %v514_v19 = vsub.f32 %v1912_v14, %v513_v9  ;;  %v521_v23 = vsub.f32 %v1922_v21, %v520_v10  ;;  %v548_v33 = vand.u32 4294901760, %v1942_v31 }
  0x4b   : > { %2521 = vst [vmem:[#allocation18_spill] sm:$0xff] %v2057_v17  ;;  %1463 = vmatpush1.bf16.msra.mxu0 %v2024_v4  ;;  %1364 = vmatpush1.bf16.msra.mxu1 %v2024_v4  ;;  %v555_v34 = vand.u32 4294901760, %v1945_v32  ;;  %v562_v35 = vand.u32 4294901760, %v1952_v36  ;;  %v2073_v38 = vpack.c.bf16 %v534_v25, %v527_v24  ;;  %v528_v43 = vsub.f32 %v1924_v22, %v527_v24  ;;  %p1687_p6 = pnand %p1686_p5, %p1680_p13 }
  0x4c   : > { %1464 = vmatprep.subr.bf16.mxu0 %v2488_v0  ;;  %1365 = vmatprep.subr.bf16.mxu1 %v2488_v0  ;;  %v515_v30 = vand.u32 4294901760, %v514_v19  ;;  %v522_v37 = vand.u32 4294901760, %v521_v23  ;;  %v535_v48 = vsub.f32 %v1935_v27, %v534_v25  ;;  %v2077_v9 = vpack.c.bf16 %v548_v33, %v541_v29 }
  0x4d   : > { %v542_v10 = vsub.f32 %v1937_v28, %v541_v29  ;;  %v549_v8 = vsub.f32 %v1942_v31, %v548_v33  ;;  %v2081_v19 = vpack.c.bf16 %v562_v35, %v555_v34  ;;  %v529_v23 = vand.u32 4294901760, %v528_v43 }
  0x4e   : > { %v2085_v6 = vpack.c.bf16 %v522_v37, %v515_v30  ;;  %v536_v5 = vand.u32 4294901760, %v535_v48  ;;  %v556_v24 = vsub.f32 %v1945_v32, %v555_v34  ;;  %v563_v33 = vsub.f32 %v1952_v36, %v562_v35 }
  0x4f   : > { %1466 = vmatpush1.bf16.msra.mxu0 %v2038_v11  ;;  %1367 = vmatpush1.bf16.msra.mxu1 %v2038_v11  ;;  %v543_v25 = vand.u32 4294901760, %v542_v10  ;;  %v550_v29 = vand.u32 4294901760, %v549_v8  ;;  %v569_v3 = vand.u32 4294901760, %v1961_v41  ;;  %v576_v30 = vand.u32 4294901760, %v1964_v42 }
  0x50   : > { %1467 = vmatprep.subr.bf16.mxu0 %v2488_v0  ;;  %1368 = vmatprep.subr.bf16.mxu1 %v2488_v0  ;;  %v2092_v56 = vpack.c.bf16 %v536_v5, %v529_v23  ;;  %v557_v55 = vand.u32 4294901760, %v556_v24  ;;  %v583_v37 = vand.u32 4294901760, %v1974_v46  ;;  %v564_v34 = vand.u32 4294901760, %v563_v33 }
  0x51   : > { %v2096_v43 = vpack.c.bf16 %v550_v29, %v543_v25  ;;  %v570_v48 = vsub.f32 %v1961_v41, %v569_v3  ;;  %v590_v52 = vand.u32 4294901760, %v1977_v47  ;;  %v2102_v8 = vpack.c.bf16 %v576_v30, %v569_v3 }
  0x52   : > { %v577_v5 = vsub.f32 %v1964_v42, %v576_v30  ;;  %v584_v35 = vsub.f32 %v1974_v46, %v583_v37  ;;  %v597_v10 = vand.u32 4294901760, %v1983_v50  ;;  %v2109_v23 = vpack.c.bf16 %v564_v34, %v557_v55 }
  0x53   : > { %1469 = vmatpush1.bf16.msra.mxu0 %v2040_v12  ;;  %1370 = vmatpush1.bf16.msra.mxu1 %v2040_v12  ;;  %v571_v24 = vand.u32 4294901760, %v570_v48  ;;  %v2111_v25 = vpack.c.bf16 %v590_v52, %v583_v37  ;;  %v591_v29 = vsub.f32 %v1977_v47, %v590_v52  ;;  %v604_v51 = vand.u32 4294901760, %v1991_v54 }
  0x54   : > { %1470 = vmatprep.subr.bf16.mxu0 %v2488_v0  ;;  %1371 = vmatprep.subr.bf16.mxu1 %v2488_v0  ;;  %v578_v33 = vand.u32 4294901760, %v577_v5  ;;  %v585_v3 = vand.u32 4294901760, %v584_v35  ;;  %v598_v30 = vsub.f32 %v1983_v50, %v597_v10  ;;  %v2522_v12 = vand.u32 4294901760, %v1956_v39 }
  0x55   : > { %v2523_v11 = vand.u32 4294901760, %v1958_v40  ;;  %v592_v0 = vand.u32 4294901760, %v591_v29  ;;  %v2126_v52 = vpack.c.bf16 %v604_v51, %v597_v10  ;;  %v605_v34 = vsub.f32 %v1991_v54, %v604_v51 }
  0x56   : > { %v2124_v55 = vpack.c.bf16 %v578_v33, %v571_v24  ;;  %v599_v37 = vand.u32 4294901760, %v598_v30  ;;  %v2525_v48 = vmov 0.0|0.0   ;;  %v611_v40 = vand.u32 4294901760, %v2002_v59 }
  0x57   : > { %v2120_v4 = vpack.c.bf16 %v2523_v11, %v2522_v12  ;;  %1472 = vmatpush1.bf16.msra.mxu0 %v2052_v16  ;;  %1373 = vmatpush1.bf16.msra.mxu1 %v2052_v16  ;;  %v2131_v39 = vpack.c.bf16 %v592_v0, %v585_v3  ;;  %v618_v11 = vand.u32 4294901760, %v2007_v60  ;;  %v606_v12 = vand.u32 4294901760, %v605_v34 }
  0x58   : > { %1473 = vmatprep.subr.bf16.mxu0 %v2525_v48  ;;  %1374 = vmatprep.subr.bf16.mxu1 %v2525_v48  ;;  %v612_v35 = vsub.f32 %v2002_v59, %v611_v40  ;;  %v2526_v51 = vand.u32 4294901760, %v1966_v44  ;;  %v2527_v0 = vand.u32 4294901760, %v1968_v45  ;;  %v625_v33 = vand.u32 4294901760, %v2014_v62 }
  0x59   : > { %2524 = vst [vmem:[#allocation19_spill] sm:$0xff] %v2120_v4  ;;  %v2135_v5 = vpack.c.bf16 %v618_v11, %v611_v40  ;;  %v619_v10 = vsub.f32 %v2007_v60, %v618_v11  ;;  %v2147_v29 = vpack.c.bf16 %v606_v12, %v599_v37  ;;  %v632_v3 = vand.u32 4294901760, %v2019_v63 }
  0x5a   : > { %v2145_v24 = vpack.c.bf16 %v2527_v0, %v2526_v51  ;;  %v613_v30 = vand.u32 4294901760, %v612_v35  ;;  %v626_v44 = vsub.f32 %v2014_v62, %v625_v33  ;;  %v2529_v11 = vand.u32 4294901760, %v1987_v53  ;;  %v368_v53 = vld [vmem:[#allocation2 + $0xb0] sm:$0xf] }
  0x5b   : > { %1475 = vmatpush1.bf16.msra.mxu0 %v2120_v4  ;;  %1376 = vmatpush1.bf16.msra.mxu1 %v2120_v4  ;;  %v620_v34 = vand.u32 4294901760, %v619_v10  ;;  %v2153_v40 = vpack.c.bf16 %v632_v3, %v625_v33  ;;  %v633_v45 = vsub.f32 %v2019_v63, %v632_v3  ;;  %v2530_v37 = vand.u32 4294901760, %v1995_v57 }
  0x5c   : > { %2528 = vst [vmem:[#allocation20_spill] sm:$0xff] %v2145_v24  ;;  %1476 = vmatprep.subr.bf16.mxu0 %v2525_v48  ;;  %1377 = vmatprep.subr.bf16.mxu1 %v2525_v48  ;;  %v627_v35 = vand.u32 4294901760, %v626_v44  ;;  %v639_v0 = vand.u32 4294901760, %v2033_v7  ;;  %v646_v33 = vand.u32 4294901760, %v2045_v13  ;;  %v2532_v44 = vand.u32 4294901760, %v1997_v58 }
  0x5d   : > { %v2161_v12 = vpack.c.bf16 %v2530_v37, %v2529_v11  ;;  %v2163_v51 = vpack.c.bf16 %v620_v34, %v613_v30  ;;  %v634_v10 = vand.u32 4294901760, %v633_v45  ;;  %v2533_v45 = vand.u32 4294901760, %v2009_v61 }
  0x5e   : > { %v2173_v3 = vpack.c.bf16 %v646_v33, %v639_v0  ;;  %v640_v30 = vsub.f32 %v2033_v7, %v639_v0  ;;  %v647_v34 = vsub.f32 %v2045_v13, %v646_v33  ;;  %v2189_v0 = vsel %vm388_vm0, %v368_v53, 0 }
  0x5f   : > { %2531 = vst [vmem:[#allocation21_spill] sm:$0xff] %v2161_v12  ;;  %1478 = vmatpush1.bf16.msra.mxu0 %v2145_v24  ;;  %1379 = vmatpush1.bf16.msra.mxu1 %v2145_v24  ;;  %v2171_v57 = vpack.c.bf16 %v634_v10, %v627_v35  ;;  %v2181_v11 = vpack.c.bf16 %v2533_v45, %v2532_v44  ;;  %v653_v35 = vand.u32 4294901760, %v2050_v15  ;;  %v660_v10 = vand.u32 4294901760, %v2057_v17 }
  0x60   : > { %1479 = vmatprep.subr.bf16.mxu0 %v2525_v48  ;;  %1380 = vmatprep.subr.bf16.mxu1 %v2525_v48  ;;  %v641_v37 = vand.u32 4294901760, %v640_v30  ;;  %v648_v24 = vand.u32 4294901760, %v647_v34  ;;  %v2200_v30 = vand.u32 4294901760, %v2189_v0  ;;  %v328_v53 = vlaneseq }
  0x61   : > { %2534 = vst [vmem:[#allocation22_spill] sm:$0xff] %v2181_v11  ;;  %v2193_v61 = vpack.c.bf16 %v660_v10, %v653_v35  ;;  %v654_v33 = vsub.f32 %v2050_v15, %v653_v35  ;;  %v661_v44 = vsub.f32 %v2057_v17, %v660_v10  ;;  %v297_v35 = vld [vmem:[%s293_s26] sm:$0x3]  ;;  %vm381_vm4 = vcmask 424960  }
  0x62   : > { %v2191_v58 = vpack.c.bf16 %v648_v24, %v641_v37 }
  0x63   : > { %1481 = vmatpush1.bf16.msra.mxu0 %v2161_v12  ;;  %1382 = vmatpush1.bf16.msra.mxu1 %v2161_v12  ;;  %v655_v34 = vand.u32 4294901760, %v654_v33  ;;  %v662_v45 = vand.u32 4294901760, %v661_v44  ;;  %v2492_v12 = vmov 0.0   ;;  %v329_v33 = vshrl.u32 %v328_v53, 7  ;;  %v370_v44 = vld [vmem:[%s278_s21 + $0x8] sm:$0xff] }
  0x64   : > { %1482 = vmatprep.subr.bf16.mxu0 %v2525_v48  ;;  %1383 = vmatprep.subr.bf16.mxu1 %v2525_v48 }
  0x65   : > { %v2204_v24 = vpack.c.bf16 %v662_v45, %v655_v34  ;;  %v1769_v34 = vmov 0   ;;  %v369_v45 = vld [vmem:[%s278_s21] sm:$0xff]  ;;  %v330_v10 = vsub.s32 0, %v329_v33  ;;  %v334_v53 = vsub.s32 1, %v329_v33 }
  0x66   : > { %1647 = vset.pattern.permute.xlu0 %v1769_v34  ;;  %1648 = vset.pattern.permute.xlu1 %v1769_v34 }
  0x67   : > { %1484 = vmatpush1.bf16.msra.mxu0 %v2181_v11  ;;  %1385 = vmatpush1.bf16.msra.mxu1 %v2181_v11  ;;  %v331_v37 = vrot.slane %v297_v35, %v330_v10  ;;  %v335_v11 = vrot.slane %v297_v35, %v334_v53 }
  0x68   : > { %899 = vmatprep.subr.mxu0 %v2492_v12  ;;  %458 = vmatprep.subr.mxu1 %v2492_v12 }
  0x69   : > { %373 = vperm.xlu0 %1647, %v369_v45   ;;  %378 = vperm.xlu1 %1648, %v370_v44  }
  0x6b   : > { %901 = vmatpush1.msra.mxu0 %v2200_v30  ;;  %460 = vmatpush1.msra.mxu1 %v2200_v30 }
  0x6c   : > { %1485 = vmatprep.subr.bf16.mxu0 %v2525_v48  ;;  %1386 = vmatprep.subr.bf16.mxu1 %v2525_v48 }
  0xb2   : > { %v301_v12 = vpop.permute.xlu1 %300  ;;  %v307_v15 = vpop.permute.xlu0 %306 }
  0xb3   : > { %v319_v17 = vsel %vm318_vm1, %v1903_v1, %v301_v12 }
  0xb4   : > { %v322_v34 = vsel %vm321_vm2, %v319_v17, %v307_v15 }
  0xb5   : > { %v338_v7 = vsub.f32 %v322_v34, %v331_v37 }
  0xb6   : > { %v313_v13 = vpop.permute.xlu0 %312  ;;  %v309_v62 = vpop.permute.xlu1 %308 }
  0xb7   : > { %v342_v45 = vand.u32 2147483647, %v338_v7  ;;  %v325_v44 = vsel %vm324_vm3, %v307_v15, %v313_v13 }
  0xb8   : > { %v339_v63 = vsub.f32 %v325_v44, %v335_v11 }
  0xb9   : > { %v2244_v59 = vand.u32 4294901760, %v342_v45 }
  0xba   : > { %v343_v33 = vand.u32 2147483647, %v339_v63  ;;  %v315_v10 = vpop.permute.xlu0 %314  ;;  %v303_v60 = vpop.permute.xlu1 %302 }
  0xbb   : > { %v2247_v4 = vsub.f32 %v342_v45, %v2244_v59  ;;  %v326_v1 = vsel %vm324_vm3, %v309_v62, %v315_v10  ;;  %v320_v17 = vsel %vm318_vm1, %v1905_v2, %v303_v60 }
  0xbc   : > { %v383_v12 = vsel %vm381_vm4, %v343_v33, 0  ;;  %v341_v35 = vsub.f32 %v326_v1, %v335_v11  ;;  %v323_v7 = vsel %vm321_vm2, %v320_v17, %v309_v62 }
  0xbd   : > { %v2253_v13 = vand.u32 4294901760, %v383_v12  ;;  %v340_v15 = vsub.f32 %v323_v7, %v331_v37  ;;  %v487_v63 = vand.u32 4294901760, %v2247_v4 }
  0xbe   : > { %v345_v53 = vand.u32 2147483647, %v341_v35 }
  0xbf   : > { %v344_v34 = vand.u32 2147483647, %v340_v15  ;;  %v2257_v44 = vsub.f32 %v383_v12, %v2253_v13  ;;  %v488_v62 = vsub.f32 %v2247_v4, %v487_v63 }
  0xc0   : > { %v386_v45 = vsel %vm381_vm4, %v345_v53, 0 }
  0xc1   : > { %v2260_v10 = vand.u32 4294901760, %v386_v45  ;;  %v2262_v2 = vand.u32 4294901760, %v344_v34  ;;  %v481_v60 = vand.u32 4294901760, %v2257_v44  ;;  %v489_v35 = vand.u32 4294901760, %v488_v62 }
  0xc3   : > { %v2267_v11 = vsub.f32 %v386_v45, %v2260_v10  ;;  %v2270_v37 = vsub.f32 %v344_v34, %v2262_v2  ;;  %923 = vmatprep.mubr.f32.mxu0 %v481_v60  ;;  %v482_v33 = vsub.f32 %v2257_v44, %v481_v60 }
  0xc4   : > { %927 = vmatmul.mubr.f32.vlgmr.msra.gmra.mrb[0].mxu0 %v487_v63 }
  0xc5   : > { %1487 = vmatpush1.bf16.msra.mxu0 %v2059_v18  ;;  %v483_v1 = vand.u32 4294901760, %v482_v33  ;;  %v496_v17 = vand.u32 4294901760, %v2267_v11  ;;  %v502_v12 = vand.u32 4294901760, %v2270_v37 }
  0xc6   : > { %1488 = vmatprep.subr.bf16.mxu0 %v2525_v48 }
  0xc7   : > { %484 = vmatprep.mubr.f32.mxu1 %v483_v1  ;;  %934 = vmatprep.mubr.f32.mxu0 %v496_v17  ;;  %v497_v7 = vsub.f32 %v2267_v11, %v496_v17  ;;  %v503_v15 = vsub.f32 %v2270_v37, %v502_v12 }
  0xc8   : > { %490 = vmatmul.mubr.f32.vlgmr.msra.gmra.mrb[0].mxu1 %v489_v35  ;;  %938 = vmatmul.mubr.f32.gmra.mrb[2].mxu0 %v502_v12 }
  0xc9   : > { %1388 = vmatpush1.bf16.msra.mxu1 %v2085_v6  ;;  %1490 = vmatpush1.bf16.msra.mxu0 %v2073_v38  ;;  %v498_v18 = vand.u32 4294901760, %v497_v7  ;;  %v504_v53 = vand.u32 4294901760, %v503_v15 }
  0xca   : > { %1077 = vmatprep.mubr.f32.mxu0 %v2253_v13  ;;  %1389 = vmatprep.subr.bf16.mxu1 %v2525_v48 }
  0xcb   : > { %499 = vmatprep.mubr.f32.mxu1 %v498_v18  ;;  %1491 = vmatprep.subr.bf16.mxu0 %v2525_v48 }
  0xcc   : > { %505 = vmatmul.mubr.f32.gmra.mrb[2].mxu1 %v504_v53 }
  0xcd   : > { %1391 = vmatpush1.bf16.msra.mxu1 %v2092_v56  ;;  %1493 = vmatpush1.bf16.msra.mxu0 %v2077_v9  ;;  %v2311_v56 = vsub.f32 %v2189_v0, %v2200_v30  ;;  %v2535_v9 = vmov 0.0  }
  0xce   : > { %690 = vmatprep.mubr.f32.mxu1 %v2253_v13  ;;  %1392 = vmatprep.subr.bf16.mxu1 %v2525_v48 }
  0xcf   : > { %1494 = vmatprep.subr.bf16.mxu0 %v2525_v48  ;;  %v667_v6 = vand.u32 4294901760, %v2311_v56 }
  0xd1   : > { %1394 = vmatpush1.bf16.msra.mxu1 %v2096_v43  ;;  %1496 = vmatpush1.bf16.msra.mxu0 %v2081_v19  ;;  %v668_v38 = vsub.f32 %v2311_v56, %v667_v6  ;;  %v2536_v43 = vpack.c.bf16 %v1922_v21, %v1912_v14  ;;  %v2538_v14 = vpack.c.bf16 %v1942_v31, %v1937_v28  ;;  %v2539_v21 = vld [vmem:[#allocation12_spill] sm:$0xff]  ;;  %v2543_v28 = vld [vmem:[#allocation15_spill] sm:$0xff] }
  0xd2   : > { %1395 = vmatprep.subr.bf16.mxu1 %v2525_v48  ;;  %1497 = vmatprep.subr.bf16.mxu0 %v2525_v48  ;;  %v2544_v31 = vpack.c.bf16 %v1977_v47, %v1974_v46  ;;  %v2550_v47 = vld [vmem:[#allocation20_spill] sm:$0xff] }
  0xd3   : > { %v669_v19 = vand.u32 4294901760, %v668_v38 }
  0xd5   : > { %1397 = vmatpush1.bf16.msra.mxu1 %v2109_v23  ;;  %1499 = vmatpush1.bf16.msra.mxu0 %v2102_v8  ;;  %v2555_v8 = vld [vmem:[#allocation16_spill] sm:$0xff]  ;;  %v2556_v23 = vld [vmem:[#allocation13_spill] sm:$0xff] }
  0xd6   : > { %1398 = vmatprep.subr.bf16.mxu1 %v2525_v48  ;;  %1500 = vmatprep.subr.bf16.mxu0 %v2525_v48 }
  0xd9   : > { %1400 = vmatpush1.bf16.msra.mxu1 %v2124_v55  ;;  %1502 = vmatpush1.bf16.msra.mxu0 %v2111_v25  ;;  %v2557_v25 = vpack.c.bf16 %v2555_v8, %v2556_v23  ;;  %v2558_v55 = vld [vmem:[#allocation22_spill] sm:$0xff] }
  0xda   : > { %1401 = vmatprep.subr.bf16.mxu1 %v2525_v48  ;;  %1503 = vmatprep.subr.bf16.mxu0 %v2525_v48 }
  0xdd   : > { %1403 = vmatpush1.bf16.msra.mxu1 %v2131_v39  ;;  %1505 = vmatpush1.bf16.msra.mxu0 %v2126_v52  ;;  %v2559_v52 = vld [vmem:[#allocation18_spill] sm:$0xff]  ;;  %v2560_v39 = vld [vmem:[#allocation17_spill] sm:$0xff] }
  0xde   : > { %1404 = vmatprep.subr.bf16.mxu1 %v2525_v48  ;;  %1506 = vmatprep.subr.bf16.mxu0 %v2525_v48 }
  0xe1   : > { %1406 = vmatpush1.bf16.msra.mxu1 %v2147_v29  ;;  %1508 = vmatpush1.bf16.msra.mxu0 %v2135_v5  ;;  %v2561_v5 = vpack.c.bf16 %v2559_v52, %v2560_v39 }
  0xe2   : > { %1407 = vmatprep.subr.bf16.mxu1 %v2525_v48  ;;  %1509 = vmatprep.subr.bf16.mxu0 %v2525_v48 }
  0xe5   : > { %1409 = vmatpush1.bf16.msra.mxu1 %v2163_v51  ;;  %1511 = vmatpush1.bf16.msra.mxu0 %v2153_v40 }
  0xe6   : > { %1410 = vmatprep.subr.bf16.mxu1 %v2525_v48  ;;  %1512 = vmatprep.subr.bf16.mxu0 %v2525_v48 }
  0xe8   : > { %v374_v40 = vpop.permute.xlu0 %373 }
  0xe9   : > { %1412 = vmatpush1.bf16.msra.mxu1 %v2171_v57  ;;  %1514 = vmatpush1.bf16.msra.mxu0 %v2173_v3 }
  0xea   : > { %1413 = vmatprep.subr.bf16.mxu1 %v2525_v48  ;;  %1515 = vmatprep.subr.bf16.mxu0 %v2525_v48 }
  0xed   : > { %1415 = vmatpush1.bf16.msra.mxu1 %v2191_v58  ;;  %1517 = vmatpush1.bf16.msra.mxu0 %v2193_v61  ;;  %v379_v58 = vpop.permute.xlu1 %378 }
  0xee   : > { %1416 = vmatprep.subr.bf16.mxu1 %v2525_v48  ;;  %1053 = vmatprep.subr.mxu0 %v2535_v9 }
  0xf1   : > { %1418 = vmatpush1.bf16.msra.mxu1 %v2204_v24  ;;  %1057 = vmatpush1.msra.mxu0 %v667_v6 }
  0xf2   : > { %1079 = vmatmul.mubr.f32.vlgmr.msra.gmra.mrb[0].mxu0 %v2244_v59  ;;  %1518 = vmatprep.subr.bf16.mxu0 %v2525_v48 }
  0xf3   : > { %1084 = vmatprep.mubr.f32.mxu0 %v2260_v10  ;;  %1520 = vmatpush1.bf16.msra.mxu0 %v1920_v20  ;;  %v2537_v20 = vpack.c.bf16 %v1935_v27, %v1924_v22  ;;  %v2540_v22 = vpack.c.bf16 %v1952_v36, %v1945_v32  ;;  %v2542_v27 = vpack.c.bf16 %v1964_v42, %v1961_v41  ;;  %v2546_v36 = vld [vmem:[#allocation19_spill] sm:$0xff]  ;;  %v2547_v41 = vld [vmem:[#allocation9_spill] sm:$0xff]  ;;  %v2548_v42 = vld [vmem:[#allocation8_spill] sm:$0xff] }
  0xf4   : > { %664 = vmatprep.subr.mxu1 %v2535_v9  ;;  %1521 = vmatprep.subr.bf16.mxu0 %v2525_v48  ;;  %v2545_v32 = vpack.c.bf16 %v1991_v54, %v1983_v50  ;;  %v2549_v46 = vpack.c.bf16 %v2547_v41, %v2548_v42  ;;  %v2554_v54 = vld [vmem:[#allocation21_spill] sm:$0xff] }
  0xf5   : > { %670 = vmatpush1.msra.mxu1 %v669_v19 }
  0xf6   : > { %692 = vmatmul.mubr.f32.vlgmr.msra.gmra.mrb[0].mxu1 %v2244_v59  ;;  %1419 = vmatprep.subr.bf16.mxu1 %v2525_v48 }
  0xf7   : > { %1086 = vmatmul.mubr.f32.gmra.mrb[2].mxu0 %v2262_v2  ;;  %697 = vmatprep.mubr.f32.mxu1 %v2260_v10 }
  0xf8   : > { %1421 = vmatpush1.bf16.msra.mxu1 %v2536_v43  ;;  %1523 = vmatpush1.bf16.msra.mxu0 %v1933_v26  ;;  %v2541_v26 = vld [vmem:[#allocation14_spill] sm:$0xff] }
  0xf9   : > { %1179 = vmatprep.mubr.f32.mxu0 %v2253_v13  ;;  %1422 = vmatprep.subr.bf16.mxu1 %v2525_v48 }
  0xfa   : > { %699 = vmatmul.mubr.f32.gmra.mrb[2].mxu1 %v2262_v2  ;;  %1524 = vmatprep.subr.bf16.mxu0 %v2525_v48 }
  0xfb   : > { %816 = vmatprep.mubr.f32.mxu1 %v2257_v44 }
  0xfc   : > { %1424 = vmatpush1.bf16.msra.mxu1 %v2537_v20  ;;  %1526 = vmatpush1.bf16.msra.mxu0 %v1981_v49  ;;  %v2551_v49 = vld [vmem:[#allocation11_spill] sm:$0xff] }
  0xfd   : > { %1425 = vmatprep.subr.bf16.mxu1 %v2525_v48  ;;  %1527 = vmatprep.subr.bf16.mxu0 %v2525_v48 }
 0x100   : > { %1427 = vmatpush1.bf16.msra.mxu1 %v2538_v14  ;;  %1529 = vmatpush1.bf16.msra.mxu0 %v2539_v21 }
 0x101   : > { %1428 = vmatprep.subr.bf16.mxu1 %v2525_v48  ;;  %1530 = vmatprep.subr.bf16.mxu0 %v2525_v48 }
 0x104   : > { %1430 = vmatpush1.bf16.msra.mxu1 %v2540_v22  ;;  %1532 = vmatpush1.bf16.msra.mxu0 %v2541_v26 }
 0x105   : > { %1431 = vmatprep.subr.bf16.mxu1 %v2525_v48  ;;  %1533 = vmatprep.subr.bf16.mxu0 %v2525_v48 }
 0x108   : > { %1433 = vmatpush1.bf16.msra.mxu1 %v2542_v27  ;;  %1535 = vmatpush1.bf16.msra.mxu0 %v2543_v28 }
 0x109   : > { %1434 = vmatprep.subr.bf16.mxu1 %v2525_v48  ;;  %1536 = vmatprep.subr.bf16.mxu0 %v2525_v48 }
 0x10c   : > { %1436 = vmatpush1.bf16.msra.mxu1 %v2544_v31  ;;  %1538 = vmatpush1.bf16.msra.mxu0 %v2052_v16  ;;  %v2552_v16 = vld [vmem:[#allocation10_spill] sm:$0xff] }
 0x10d   : > { %1437 = vmatprep.subr.bf16.mxu1 %v2525_v48  ;;  %1539 = vmatprep.subr.bf16.mxu0 %v2525_v48  ;;  %v2553_v50 = vpack.c.bf16 %v2551_v49, %v2552_v16 }
 0x110   : > { %1439 = vmatpush1.bf16.msra.mxu1 %v2545_v32  ;;  %1541 = vmatpush1.bf16.msra.mxu0 %v2546_v36 }
 0x111   : > { %1440 = vmatprep.subr.bf16.mxu1 %v2525_v48  ;;  %1542 = vmatprep.subr.bf16.mxu0 %v2525_v48 }
 0x114   : > { %1442 = vmatpush1.bf16.msra.mxu1 %v2549_v46  ;;  %1544 = vmatpush1.bf16.msra.mxu0 %v2550_v47 }
 0x115   : > { %1443 = vmatprep.subr.bf16.mxu1 %v2525_v48  ;;  %1545 = vmatprep.subr.bf16.mxu0 %v2525_v48 }
 0x118   : > { %1445 = vmatpush1.bf16.msra.mxu1 %v2553_v50  ;;  %1547 = vmatpush1.bf16.msra.mxu0 %v2554_v54 }
 0x119   : > { %1446 = vmatprep.subr.bf16.mxu1 %v2525_v48  ;;  %1548 = vmatprep.subr.bf16.mxu0 %v2525_v48 }
 0x11c   : > { %1448 = vmatpush1.bf16.msra.mxu1 %v2557_v25  ;;  %1550 = vmatpush1.bf16.msra.mxu0 %v2558_v55 }
 0x11d   : > { %1449 = vmatprep.subr.bf16.mxu1 %v2525_v48  ;;  %1157 = vmatprep.subr.mxu0 %v2535_v9 }
 0x120   : > { %1451 = vmatpush1.bf16.msra.mxu1 %v2561_v5  ;;  %1159 = vmatpush1.msra.mxu0 %v2200_v30 }
 0x121   : > { %1181 = vmatmul.mubr.f32.vlgmr.msra.gmra.mrb[0].mxu0 %v2244_v59  ;;  %792 = vmatprep.subr.mxu1 %v2535_v9 }
 0x122   : > { %1186 = vmatprep.mubr.f32.mxu0 %v2260_v10 }
 0x124   : > { %795 = vmatpush1.msra.mxu1 %v2311_v56 }
 0x125   : > { %819 = vmatmul.mubr.f32.vlgmr.msra.gmra.mrb[0].mxu1 %v2247_v4  ;;  %1188 = vmatmul.mubr.f32.gmra.mrb[2].mxu0 %v2262_v2 }
 0x126   : > { %825 = vmatprep.mubr.f32.mxu1 %v2267_v11 }
 0x129   : > { %828 = vmatmul.mubr.f32.gmra.mrb[2].mxu1 %v2270_v37 }
 0x1f4   : > { %v1182_v48 = vpop.f32.mrb[0].mxu0 }
 0x1f5   : > { %v1184_v29 = vpop.f32.mrb[1].mxu0 }
 0x1f8   : > { %v820_v59 = vpop.f32.mrb[0].mxu1  ;;  %v1189_v51 = vpop.f32.mrb[2].mxu0 }
 0x1f9   : > { %v1551_v57 = vadd.f32 %v820_v59, %v374_v40  ;;  %v822_v3 = vpop.f32.mrb[1].mxu1  ;;  %v1191_v0 = vpop.f32.mrb[3].mxu0 }
 0x1fb   : > { %v1552_v4 = vadd.f32 %v1551_v57, %v1182_v48 }
 0x1fc   : > { %v829_v61 = vpop.f32.mrb[2].mxu1 }
 0x1fd   : > { %1193 = vst [vmem:[%s269_s29] sm:$0xff] %v1552_v4  ;;  %v1553_v30 = vadd.f32 %v829_v61, %v379_v58  ;;  %v831_v24 = vpop.f32.mrb[3].mxu1 }
 0x1ff   : > { %v1554_v13 = vadd.f32 %v1553_v30, %v1189_v51 }
 0x201   : > { %1194 = vst [vmem:[%s269_s29 + $0x8] sm:$0xff] %v1554_v13 }
 0x202   : > { %1690 = shalt.err (!%p1687_p6)
}
 0x203   : > { %s1691_s21 = scalar_lea.hbm %s2420_s10, 256  ;;  %s1695_s26 = scalar_lea.hbm %s2472_s4, 512 }
 0x204   : > { %p1692_p7 = scmp.ne.s32.totalorder %s2420_s10, %s1691_s21  ;;  %p1696_p0 = scmp.lt.u32.totalorder %s2420_s10, %s2472_s4 }
 0x205   : > { %p1697_p2 = scmp.lt.u32.totalorder %s1695_s26, %s1691_s21  ;;  %p1699_p8 = scmp.lt.u32.totalorder %s1691_s21, %s2420_s10 }
 0x206   : > { %p1693_p9 = pnand %p1692_p7, %p2562_p10 }
 0x207   : > { %p1698_p4 = por %p1697_p2, %p1696_p0 }
 0x208   : > { %p1694_p12 = pneg %p1693_p9 }
 0x209   : > { %p1700_p11 = por %p1699_p8, %p1698_p4 }
 0x20b   : > { %p1701_p13 = pnand %p1700_p11, %p1694_p12 }
 0x20d   : > { %1704 = shalt.err (!%p1701_p13)
}
 0x20e   : > { %s1771_s29 = smov 128   ;;  %s1772_s8 = smov 8  }
 0x20f   : > { %1575 = dma.vmem_to_hbm [thread:$0]  (%p2562_p10), %s2415_s6, 256, %s2420_s10, %s2422_s11, %s1771_s29, %s1771_s29, %s1772_s8  }
 0x210 PF: > { %p1587_p1 = scmp.ge.s32.totalorder %s1759_s20, 2  ;;  %s1226_s9 = sand.u32 1, %s1739_s15  }
 0x211   : > { %p2563_p3 = scmp.ne.s32.totalorder %s2505_s27, 0  ;;  %s1227_s30 = scalar_lea.sflag [#allocation4], %s1226_s9 }
 0x213   : > { %p1582_p5 = pnand %p1587_p1, %p2563_p3 }
 0x215   : > { %1734 = dma.done.wait (!%p1582_p5), %s1227_s30, 256  }
 0x216   : > { %1736 = vsyncadd (!%p1582_p5), %s1227_s30, 4294967040  ;;  %s18_s20 = sadd.s32 1, %s1759_s20   ;;  %s2564_s15 = smov %s1743_s16 }
 0x217   : > { %p15_p6 = scmp.ge.s32.totalorder %s18_s20, 4   ;;  %s2565_s16 = smov %s1747_s17 }
 0x218   : > { %s2566_s17 = smov %s1851_s28  ;;  %s2567_s18 = smov %s1755_s19 }
 0x219   : > { %s2568_s19 = smov %s2570_s23  ;;  %17 = sbr.rel (!%p15_p6) target bundleno = 5 (0x5), region = 82 }
 0x220   :  { %1232 = vsyncpa [#allocation3], 1 }
 0x221   :  { %1234 = vsyncpa [#allocation3 + $0x1], 1 }
 0x222   :  { %1235 = vsyncpa [#allocation4], 1 }
 0x223   :  { %1237 = vsyncpa [#allocation4 + $0x1], 1 }

</bundles_post_ra>
